<compile_context>
chip_gen: v7x
topology: tpu7x:2x2x1
jax: 0.10.0
libtpu: 0.0.40
codegen_flags: <defaults>
</compile_context>

<pallas_src>
import functools

import jax
import jax.numpy as jnp
from jax.experimental import pallas as pl
from jax.experimental.pallas import tpu as pltpu

LN_EPS = 1e-5  # PyTorch nn.LayerNorm default eps


def _ln_proj_kernel(m_ref, mask_ref, gamma_ref, beta_ref,
                    w1_ref, b1_ref, w2_ref, b2_ref, we_ref,
                    a_ref, g_ref):
    """LayerNorm + both projections + stage-1 matmul for one row tile."""
    x = m_ref[...]                                 # (TN, Cm) f32
    msk = mask_ref[...]                            # (TN, 1)  f32

    # LayerNorm over channels (biased variance, torch semantics).
    mu = jnp.mean(x, axis=-1, keepdims=True)
    xc = x - mu
    var = jnp.mean(xc * xc, axis=-1, keepdims=True)
    ln = xc * jax.lax.rsqrt(var + LN_EPS)
    ln = ln * gamma_ref[...] + beta_ref[...]

    # a / b projections, masked.
    a = (jnp.dot(ln, w1_ref[...], preferred_element_type=jnp.float32)
         + b1_ref[...]) * msk
    b = (jnp.dot(ln, w2_ref[...], preferred_element_type=jnp.float32)
         + b2_ref[...]) * msk
    a_ref[...] = a.astype(a_ref.dtype)

    # Stage 1: G[j, c*Cz + z] = sum_e b[j, e] * We[e, c*Cz + z]
    g_ref[...] = jnp.dot(b, we_ref[...],
                         preferred_element_type=jnp.float32).astype(g_ref.dtype)


def _pair_kernel(tj, cz, a_ref, g_ref, ninv_ref, bo_ref, o_ref):
    """Stage-2 matmuls for one (i-tile, j-tile) pair; flat lane-dense stores."""
    a_t = a_ref[...]                               # (TI, Ch)
    scale = ninv_ref[...]                          # (TI, 1)
    bias = bo_ref[...]                             # (1, Cz)
    # g_ref block is (TJ, Ch, Cz); g_ref[jj] is a contiguous (Ch, Cz) slab.
    # Each store targets columns [jj*Cz, (jj+1)*Cz) of the flat (TI, TJ*Cz)
    # output block: 128-lane aligned, unmasked full-width stores.
    for jj in range(tj):
        y = jnp.dot(a_t, g_ref[jj], preferred_element_type=jnp.float32)  # (TI, Cz)
        o_ref[:, jj * cz:(jj + 1) * cz] = ((y + bias) * scale).astype(o_ref.dtype)


def outer_product_mean(m, mask, params, *, eps=1e-3, tn=256, ti=256, tj=32):
    """m: [N, C_m], mask: [N] or None -> [N, N, C_z].

    params = (gamma, beta, w1, b1, w2, b2, wo, bo) with JAX layouts:
      w1, w2: [C_m, C_h]      (= torch Linear.weight.T)
      wo:     [C_h*C_h, C_z]  (= torch linear_out.weight.T, flat index c*C_h+e)
    """
    gamma, beta, w1, b1, w2, b2, wo, bo = params
    N, Cm = m.shape
    Ch = w1.shape[1]
    Cz = wo.shape[1]

    tn = min(tn, N)
    ti = min(ti, N)
    tj = min(tj, N)

    if mask is None:
        mask = jnp.ones((N,), dtype=jnp.float32)
    mask2 = mask.reshape(N, 1).astype(jnp.float32)
    # Per-row normalizer 1/(mask[i]^2 + eps); trivial O(N) host-side compute.
    ninv = (1.0 / (mask2 * mask2 + eps)).astype(jnp.float32)

    gamma2 = gamma.reshape(1, Cm).astype(jnp.float32)
    beta2 = beta.reshape(1, Cm).astype(jnp.float32)
    b1_2 = b1.reshape(1, Ch).astype(jnp.float32)
    b2_2 = b2.reshape(1, Ch).astype(jnp.float32)
    bo2 = bo.reshape(1, Cz).astype(jnp.float32)

    # One-time weight rearrangement (pure JAX):
    #   W3[c, e, z] = wo[c*Ch + e, z];  We[e, c*Cz + z] = W3[c, e, z]
    w3 = wo.reshape(Ch, Ch, Cz)
    we = jnp.transpose(w3, (1, 0, 2)).reshape(Ch, Ch * Cz).astype(jnp.float32)

    # ---- Kernel 1: LayerNorm + projections + stage-1 matmul -----------------
    a, g2 = pl.pallas_call(
        _ln_proj_kernel,
        out_shape=(
            jax.ShapeDtypeStruct((N, Ch), jnp.float32),
            jax.ShapeDtypeStruct((N, Ch * Cz), jnp.float32),
        ),
        grid_spec=pltpu.PrefetchScalarGridSpec(
            num_scalar_prefetch=0,
            grid=(pl.cdiv(N, tn),),
            in_specs=[
                pl.BlockSpec((tn, Cm), lambda i: (i, 0)),        # m tile
                pl.BlockSpec((tn, 1), lambda i: (i, 0)),         # mask tile
                pl.BlockSpec((1, Cm), lambda i: (0, 0)),         # gamma (resident)
                pl.BlockSpec((1, Cm), lambda i: (0, 0)),         # beta
                pl.BlockSpec((Cm, Ch), lambda i: (0, 0)),        # W1
                pl.BlockSpec((1, Ch), lambda i: (0, 0)),         # b1
                pl.BlockSpec((Cm, Ch), lambda i: (0, 0)),        # W2
                pl.BlockSpec((1, Ch), lambda i: (0, 0)),         # b2
                pl.BlockSpec((Ch, Ch * Cz), lambda i: (0, 0)),   # We (resident)
            ],
            out_specs=(
                pl.BlockSpec((tn, Ch), lambda i: (i, 0)),
                pl.BlockSpec((tn, Ch * Cz), lambda i: (i, 0)),
            ),
        ),
        compiler_params=pltpu.CompilerParams(
            dimension_semantics=("parallel",)),
    )(m.astype(jnp.float32), mask2, gamma2, beta2,
      w1.astype(jnp.float32), b1_2, w2.astype(jnp.float32), b2_2, we)

    # Free XLA metadata reshape: [j, c*Cz+z] -> [j, c, z]
    g3 = g2.reshape(N, Ch, Cz)

    # ---- Kernel 2: pair tiles; j-tiles outer (G resident), i-tiles inner ----
    pair_flops = 2 * N * N * Ch * Cz
    pair_bytes = 4 * (N * Ch + N * Ch * Cz + N + Cz + N * N * Cz)
    out_flat = pl.pallas_call(
        functools.partial(_pair_kernel, tj, Cz),
        out_shape=jax.ShapeDtypeStruct((N, N * Cz), jnp.float32),
        grid_spec=pltpu.PrefetchScalarGridSpec(
            num_scalar_prefetch=0,
            grid=(pl.cdiv(N, tj), pl.cdiv(N, ti)),               # (j outer, i inner)
            in_specs=[
                pl.BlockSpec((ti, Ch), lambda j, i: (i, 0)),      # a rows (inner)
                pl.BlockSpec((tj, Ch, Cz), lambda j, i: (j, 0, 0)),  # G (outer only)
                pl.BlockSpec((ti, 1), lambda j, i: (i, 0)),       # 1/(mask^2+eps)
                pl.BlockSpec((1, Cz), lambda j, i: (0, 0)),       # out bias
            ],
            out_specs=pl.BlockSpec((ti, tj * Cz), lambda j, i: (i, j)),
        ),
        compiler_params=pltpu.CompilerParams(
            dimension_semantics=("parallel", "parallel")),
        cost_estimate=pl.CostEstimate(
            flops=pair_flops, transcendentals=0, bytes_accessed=pair_bytes),
    )(a, g3, ninv, bo2)

    return out_flat.reshape(N, N, Cz)


def outer_product_mean_ref(m, mask, params, eps=1e-3):
    """Literal pure-JAX translation of the PyTorch forward."""
    gamma, beta, w1, b1, w2, b2, wo, bo = params
    N, Cm = m.shape
    Ch = w1.shape[1]
    if mask is None:
        mask = jnp.ones((N,), dtype=jnp.float32)
    mu = m.mean(-1, keepdims=True)
    var = ((m - mu) ** 2).mean(-1, keepdims=True)
    ln = (m - mu) / jnp.sqrt(var + LN_EPS) * gamma + beta
    msk = mask[:, None]
    a = (ln @ w1 + b1) * msk
    b = (ln @ w2 + b2) * msk
    outer = jnp.einsum('bc,de->bdce', a, b)                # (N, N, Ch, Ch)
    outer = outer.reshape(N, N, Ch * Ch)
    outer = outer @ wo + bo                                 # (N, N, Cz)
    norm = jnp.einsum('...b,...d->...bd', msk, msk) + eps   # (N, 1, 1)
    return outer / norm


if __name__ == "__main__":
    key = jax.random.PRNGKey(0)
    N, Cm, Ch, Cz = 16, 32, 32, 128   # N_region, c_m, c_hidden, c_z
    ks = jax.random.split(key, 10)

    m = jax.random.normal(ks[0], (N, Cm), jnp.float32)
    gamma = 1.0 + 0.1 * jax.random.normal(ks[1], (Cm,), jnp.float32)
    beta = 0.1 * jax.random.normal(ks[2], (Cm,), jnp.float32)
    w1 = jax.random.normal(ks[3], (Cm, Ch), jnp.float32) / jnp.sqrt(Cm)
    b1 = 0.01 * jax.random.normal(ks[4], (Ch,), jnp.float32)
    w2 = jax.random.normal(ks[5], (Cm, Ch), jnp.float32) / jnp.sqrt(Cm)
    b2 = 0.01 * jax.random.normal(ks[6], (Ch,), jnp.float32)
    wo = jax.random.normal(ks[7], (Ch * Ch, Cz), jnp.float32) / Ch
    bo = 0.01 * jax.random.normal(ks[8], (Cz,), jnp.float32)
    params = (gamma, beta, w1, b1, w2, b2, wo, bo)

    # mask=None path (module default: mask of ones)
    out = jax.block_until_ready(outer_product_mean(m, None, params))
    ref = outer_product_mean_ref(m, None, params)
    assert out.shape == (N, N, Cz)
    assert jnp.allclose(out, ref, atol=2e-3, rtol=2e-3), "mismatch (mask=None)"

    # non-trivial mask path
    mask = (jax.random.uniform(ks[9], (N,)) > 0.25).astype(jnp.float32)
    out_m = jax.block_until_ready(outer_product_mean(m, mask, params))
    ref_m = outer_product_mean_ref(m, mask, params)
    assert jnp.allclose(out_m, ref_m, atol=2e-3, rtol=2e-3), "mismatch (mask)"

    print("KERNEL_OK")
</pallas_src>

<mosaic_0001>
module attributes {stable_mosaic.version = 11 : i64} {
  func.func @_ln_proj_kernel(%arg0: i32, %arg1: memref<16x32xf32, #tpu.memory_space<vmem>>, %arg2: memref<16x1xf32, #tpu.memory_space<vmem>>, %arg3: memref<1x32xf32, #tpu.memory_space<vmem>>, %arg4: memref<1x32xf32, #tpu.memory_space<vmem>>, %arg5: memref<32x32xf32, #tpu.memory_space<vmem>>, %arg6: memref<1x32xf32, #tpu.memory_space<vmem>>, %arg7: memref<32x32xf32, #tpu.memory_space<vmem>>, %arg8: memref<1x32xf32, #tpu.memory_space<vmem>>, %arg9: memref<32x4096xf32, #tpu.memory_space<vmem>>, %arg10: memref<16x32xf32, #tpu.memory_space<vmem>>, %arg11: memref<16x4096xf32, #tpu.memory_space<vmem>>) attributes {dimension_semantics = [#tpu.dimension_semantics<parallel>], iteration_bounds = array<i64: 1>, scalar_prefetch = 0 : i64, scratch_operands = 0 : i64, tpu.core_type = #tpu.core_type<tc>, window_params = [{transform_indices = @transform_0, window_bounds = array<i64: 16, 32>}, {transform_indices = @transform_1, window_bounds = array<i64: 16, 1>}, {pipeline_mode = #tpu.pipeline_mode<synchronous>, transform_indices = @transform_2, window_bounds = array<i64: 1, 32>}, {pipeline_mode = #tpu.pipeline_mode<synchronous>, transform_indices = @transform_3, window_bounds = array<i64: 1, 32>}, {pipeline_mode = #tpu.pipeline_mode<synchronous>, transform_indices = @transform_4, window_bounds = array<i64: 32, 32>}, {pipeline_mode = #tpu.pipeline_mode<synchronous>, transform_indices = @transform_5, window_bounds = array<i64: 1, 32>}, {pipeline_mode = #tpu.pipeline_mode<synchronous>, transform_indices = @transform_6, window_bounds = array<i64: 32, 32>}, {pipeline_mode = #tpu.pipeline_mode<synchronous>, transform_indices = @transform_7, window_bounds = array<i64: 1, 32>}, {pipeline_mode = #tpu.pipeline_mode<synchronous>, transform_indices = @transform_8, window_bounds = array<i64: 32, 4096>}, {transform_indices = @transform_9, window_bounds = array<i64: 16, 32>}, {transform_indices = @transform_10, window_bounds = array<i64: 16, 4096>}]} {
    %c0 = arith.constant 0 : index
    %c0_0 = arith.constant 0 : index
    %0 = vector.load %arg1[%c0, %c0_0] : memref<16x32xf32, #tpu.memory_space<vmem>>, vector<16x32xf32>
    %c0_1 = arith.constant 0 : index
    %c0_2 = arith.constant 0 : index
    %1 = vector.load %arg2[%c0_1, %c0_2] : memref<16x1xf32, #tpu.memory_space<vmem>>, vector<16x1xf32>
    %cst = arith.constant dense<0.000000e+00> : vector<16xf32>
    %2 = vector.multi_reduction <add>, %0, %cst [1] : vector<16x32xf32> to vector<16xf32>
    %3 = vector.shape_cast %2 : vector<16xf32> to vector<16x1xf32>
    %cst_3 = arith.constant 3.200000e+01 : f32
    %4 = vector.broadcast %cst_3 : f32 to vector<16x1xf32>
    %5 = arith.divf %3, %4 : vector<16x1xf32>
    %6 = vector.broadcast %5 : vector<16x1xf32> to vector<16x32xf32>
    %7 = arith.subf %0, %6 : vector<16x32xf32>
    %8 = arith.mulf %7, %7 : vector<16x32xf32>
    %cst_4 = arith.constant dense<0.000000e+00> : vector<16xf32>
    %9 = vector.multi_reduction <add>, %8, %cst_4 [1] : vector<16x32xf32> to vector<16xf32>
    %10 = vector.shape_cast %9 : vector<16xf32> to vector<16x1xf32>
    %cst_5 = arith.constant 3.200000e+01 : f32
    %11 = vector.broadcast %cst_5 : f32 to vector<16x1xf32>
    %12 = arith.divf %10, %11 : vector<16x1xf32>
    %cst_6 = arith.constant 9.99999974E-6 : f32
    %13 = vector.broadcast %cst_6 : f32 to vector<16x1xf32>
    %14 = arith.addf %12, %13 : vector<16x1xf32>
    %15 = math.rsqrt %14 : vector<16x1xf32>
    %16 = vector.broadcast %15 : vector<16x1xf32> to vector<16x32xf32>
    %17 = arith.mulf %7, %16 : vector<16x32xf32>
    %c0_7 = arith.constant 0 : index
    %c0_8 = arith.constant 0 : index
    %18 = vector.load %arg3[%c0_7, %c0_8] : memref<1x32xf32, #tpu.memory_space<vmem>>, vector<1x32xf32>
    %19 = vector.broadcast %18 : vector<1x32xf32> to vector<16x32xf32>
    %20 = arith.mulf %17, %19 : vector<16x32xf32>
    %c0_9 = arith.constant 0 : index
    %c0_10 = arith.constant 0 : index
    %21 = vector.load %arg4[%c0_9, %c0_10] : memref<1x32xf32, #tpu.memory_space<vmem>>, vector<1x32xf32>
    %22 = vector.broadcast %21 : vector<1x32xf32> to vector<16x32xf32>
    %23 = arith.addf %20, %22 : vector<16x32xf32>
    %c0_11 = arith.constant 0 : index
    %c0_12 = arith.constant 0 : index
    %24 = vector.load %arg5[%c0_11, %c0_12] : memref<32x32xf32, #tpu.memory_space<vmem>>, vector<32x32xf32>
    %cst_13 = arith.constant dense<0.000000e+00> : vector<16x32xf32>
    %25 = tpu.matmul %23, %24, %cst_13 {dimension_numbers = #tpu.dot_dimension_numbers<[1], [0], [0], [1], [0, 0, 1, 1], [], []>} : vector<16x32xf32>, vector<32x32xf32>, vector<16x32xf32> -> vector<16x32xf32>
    %c0_14 = arith.constant 0 : index
    %c0_15 = arith.constant 0 : index
    %26 = vector.load %arg6[%c0_14, %c0_15] : memref<1x32xf32, #tpu.memory_space<vmem>>, vector<1x32xf32>
    %27 = vector.broadcast %26 : vector<1x32xf32> to vector<16x32xf32>
    %28 = arith.addf %25, %27 : vector<16x32xf32>
    %29 = vector.broadcast %1 : vector<16x1xf32> to vector<16x32xf32>
    %30 = arith.mulf %28, %29 : vector<16x32xf32>
    %c0_16 = arith.constant 0 : index
    %c0_17 = arith.constant 0 : index
    %31 = vector.load %arg7[%c0_16, %c0_17] : memref<32x32xf32, #tpu.memory_space<vmem>>, vector<32x32xf32>
    %cst_18 = arith.constant dense<0.000000e+00> : vector<16x32xf32>
    %32 = tpu.matmul %23, %31, %cst_18 {dimension_numbers = #tpu.dot_dimension_numbers<[1], [0], [0], [1], [0, 0, 1, 1], [], []>} : vector<16x32xf32>, vector<32x32xf32>, vector<16x32xf32> -> vector<16x32xf32>
    %c0_19 = arith.constant 0 : index
    %c0_20 = arith.constant 0 : index
    %33 = vector.load %arg8[%c0_19, %c0_20] : memref<1x32xf32, #tpu.memory_space<vmem>>, vector<1x32xf32>
    %34 = vector.broadcast %33 : vector<1x32xf32> to vector<16x32xf32>
    %35 = arith.addf %32, %34 : vector<16x32xf32>
    %36 = vector.broadcast %1 : vector<16x1xf32> to vector<16x32xf32>
    %37 = arith.mulf %35, %36 : vector<16x32xf32>
    %c0_21 = arith.constant 0 : index
    %c0_22 = arith.constant 0 : index
    %38 = vector.load %arg10[%c0_21, %c0_22] : memref<16x32xf32, #tpu.memory_space<vmem>>, vector<16x32xf32>
    tpu.vector_store %arg10[%c0_21, %c0_22], %30 {strides = array<i32>} : memref<16x32xf32, #tpu.memory_space<vmem>>, vector<16x32xf32>,
    %c0_23 = arith.constant 0 : index
    %c0_24 = arith.constant 0 : index
    %39 = vector.load %arg9[%c0_23, %c0_24] : memref<32x4096xf32, #tpu.memory_space<vmem>>, vector<32x4096xf32>
    %cst_25 = arith.constant dense<0.000000e+00> : vector<16x4096xf32>
    %40 = tpu.matmul %37, %39, %cst_25 {dimension_numbers = #tpu.dot_dimension_numbers<[1], [0], [0], [1], [0, 0, 1, 1], [], []>} : vector<16x32xf32>, vector<32x4096xf32>, vector<16x4096xf32> -> vector<16x4096xf32>
    %c0_26 = arith.constant 0 : index
    %c0_27 = arith.constant 0 : index
    %41 = vector.load %arg11[%c0_26, %c0_27] : memref<16x4096xf32, #tpu.memory_space<vmem>>, vector<16x4096xf32>
    tpu.vector_store %arg11[%c0_26, %c0_27], %40 {strides = array<i32>} : memref<16x4096xf32, #tpu.memory_space<vmem>>, vector<16x4096xf32>,
    return
  }
  func.func @transform_0(%arg0: i32) -> (i32, i32) {
    %c0_i32 = arith.constant 0 : i32
    %c0_i32_0 = arith.constant 0 : i32
    return %arg0, %c0_i32 : i32, i32
  }
  func.func @transform_1(%arg0: i32) -> (i32, i32) {
    %c0_i32 = arith.constant 0 : i32
    %c0_i32_0 = arith.constant 0 : i32
    return %arg0, %c0_i32 : i32, i32
  }
  func.func @transform_2(%arg0: i32) -> (i32, i32) {
    %c0_i32 = arith.constant 0 : i32
    %c0_i32_0 = arith.constant 0 : i32
    %c0_i32_1 = arith.constant 0 : i32
    return %c0_i32, %c0_i32_0 : i32, i32
  }
  func.func @transform_3(%arg0: i32) -> (i32, i32) {
    %c0_i32 = arith.constant 0 : i32
    %c0_i32_0 = arith.constant 0 : i32
    %c0_i32_1 = arith.constant 0 : i32
    return %c0_i32, %c0_i32_0 : i32, i32
  }
  func.func @transform_4(%arg0: i32) -> (i32, i32) {
    %c0_i32 = arith.constant 0 : i32
    %c0_i32_0 = arith.constant 0 : i32
    %c0_i32_1 = arith.constant 0 : i32
    return %c0_i32, %c0_i32_0 : i32, i32
  }
  func.func @transform_5(%arg0: i32) -> (i32, i32) {
    %c0_i32 = arith.constant 0 : i32
    %c0_i32_0 = arith.constant 0 : i32
    %c0_i32_1 = arith.constant 0 : i32
    return %c0_i32, %c0_i32_0 : i32, i32
  }
  func.func @transform_6(%arg0: i32) -> (i32, i32) {
    %c0_i32 = arith.constant 0 : i32
    %c0_i32_0 = arith.constant 0 : i32
    %c0_i32_1 = arith.constant 0 : i32
    return %c0_i32, %c0_i32_0 : i32, i32
  }
  func.func @transform_7(%arg0: i32) -> (i32, i32) {
    %c0_i32 = arith.constant 0 : i32
    %c0_i32_0 = arith.constant 0 : i32
    %c0_i32_1 = arith.constant 0 : i32
    return %c0_i32, %c0_i32_0 : i32, i32
  }
  func.func @transform_8(%arg0: i32) -> (i32, i32) {
    %c0_i32 = arith.constant 0 : i32
    %c0_i32_0 = arith.constant 0 : i32
    %c0_i32_1 = arith.constant 0 : i32
    return %c0_i32, %c0_i32_0 : i32, i32
  }
  func.func @transform_9(%arg0: i32) -> (i32, i32) {
    %c0_i32 = arith.constant 0 : i32
    %c0_i32_0 = arith.constant 0 : i32
    return %arg0, %c0_i32 : i32, i32
  }
  func.func @transform_10(%arg0: i32) -> (i32, i32) {
    %c0_i32 = arith.constant 0 : i32
    %c0_i32_0 = arith.constant 0 : i32
    return %arg0, %c0_i32 : i32, i32
  }
}

</mosaic_0001>

<bundles_post_ra>
// kernel: tpu_custom_call.1
= control target key start
LH: loop header
LB: loop body
LE: loop exit
PB: predicated region body
PF: predicated region fallthrough
CT: control target
= control target key end

     0   :  { %16 = vsyncpa [#allocation3], 0  ;;  %s2511_s0 = inlined_call_operand.hbm [shape: f32[16,32], index: 0, kind: input, shape index: {}]   ;;  %s2512_s1 = inlined_call_operand.vmem [shape: f32[16,1], index: 1, kind: input, shape index: {}]   ;;  %s2513_s2 = inlined_call_operand.hbm [shape: f32[1,32], index: 2, kind: input, shape index: {}]   ;;  %s2514_s3 = inlined_call_operand.hbm [shape: f32[1,32], index: 3, kind: input, shape index: {}]   ;;  %s2515_s4 = inlined_call_operand.vmem [shape: f32[32,32], index: 4, kind: input, shape index: {}]   ;;  %s2516_s5 = inlined_call_operand.vmem [shape: f32[1,32], index: 5, kind: input, shape index: {}]   ;;  %s2517_s6 = inlined_call_operand.hbm [shape: f32[32,32], index: 6, kind: input, shape index: {}]   ;;  %s2518_s7 = inlined_call_operand.vmem [shape: f32[1,32], index: 7, kind: input, shape index: {}]   ;;  %s2519_s8 = inlined_call_operand.hbm [shape: f32[32,4096], index: 8, kind: input, shape index: {}]   ;;  %s2520_s9 = inlined_call_operand.hbm [shape: f32[16,32], index: 9, kind: output, shape index: {0}]   ;;  %s2521_s10 = inlined_call_operand.hbm [shape: f32[16,4096], index: 10, kind: output, shape index: {1}]  }
   0x1   :  { %17 = vsyncpa [#allocation6], 0 }
   0x2   :  { %18 = vsyncpa [#allocation9], 0 }
   0x3   :  { %19 = vsyncpa [#allocation4], 0 }
   0x4   :  { %20 = vsyncpa [#allocation13], 0  ;;  %s2210_s13 = smov [#allocation5]   ;;  %s2046_s17 = scalar_lea.hbm %s2513_s2, 16 }
   0x5   :  { %s41_s14 = sshll.u32 %s2210_s13, 4  ;;  %p2047_p0 = scmp.ne.s32.totalorder %s2513_s2, %s2046_s17  ;;  %s42_s14 = int_to_ptr.vmem [resolvable:$true] %s41_s14 }
   0x6   :  { %p2050_p1 = scmp.lt.u32.totalorder %s2046_s17, %s2513_s2 }
   0x8   :  { %p2052_p2 = pnand %p2050_p1, %p2047_p0 }
   0xa   :  { %2055 = shalt.err (!%p2052_p2)
}
   0xb   :  { %s2056_s22 = scalar_lea.vmem %s42_s14, 16  ;;  %s2060_s23 = scalar_lea.vmem %s42_s14, 32 }
   0xc   :  { %p2057_p3 = scmp.ne.s32.totalorder %s42_s14, %s2056_s22  ;;  %p2061_p4 = scmp.lt.s32.totalorder %s42_s14, %s42_s14 }
   0xd   :  { %p2062_p5 = scmp.lt.s32.totalorder %s2060_s23, %s2056_s22 }
   0xf   :  { %p2063_p6 = por %p2062_p5, %p2061_p4 }
  0x11   :  { %p2064_p7 = pnand %p2063_p6, %p2057_p3 }
  0x13   :  { %2067 = shalt.err (!%p2064_p7)
}
  0x14   :  { %44 = dma.hbm_to_vmem [thread:$0]  %s2513_s2, 16, %s42_s14, [#allocation6]  }
  0x15   :  { %s2211_s26 = smov [#allocation8]   ;;  %s2212_s28 = smov [#allocation2]  }
  0x16   :  { %s64_s27 = sshll.u32 %s2211_s26, 4  ;;  %s26_s29 = sshll.u32 %s2212_s28, 4  ;;  %s65_s27 = int_to_ptr.vmem [resolvable:$true] %s64_s27  ;;  %s27_s29 = int_to_ptr.vmem [resolvable:$true] %s26_s29 }
  0x17   :  { %s2068_s12 = scalar_lea.hbm %s2517_s6, 512 }
  0x18   :  { %p2069_p8 = scmp.ne.s32.totalorder %s2517_s6, %s2068_s12  ;;  %p2072_p9 = scmp.lt.u32.totalorder %s2068_s12, %s2517_s6 }
  0x1a   :  { %p2074_p10 = pnand %p2072_p9, %p2069_p8 }
  0x1c   :  { %2077 = shalt.err (!%p2074_p10)
}
  0x1d   :  { %s2078_s2 = scalar_lea.vmem %s65_s27, 512  ;;  %p2083_p12 = scmp.lt.s32.totalorder %s65_s27, %s65_s27 }
  0x1e   :  { %p2079_p11 = scmp.ne.s32.totalorder %s65_s27, %s2078_s2  ;;  %p2084_p13 = scmp.lt.s32.totalorder %s2078_s2, %s2078_s2 }
  0x20   :  { %p2085_p0 = por %p2084_p13, %p2083_p12 }
  0x22   :  { %p2086_p1 = pnand %p2085_p0, %p2079_p11 }
  0x24   :  { %2089 = shalt.err (!%p2086_p1)
}
  0x25   :  { %s2213_s14 = smov 128   ;;  %s2214_s18 = smov 8  }
  0x26   :  { %70 = dma.hbm_to_vmem [thread:$0]  %s2517_s6, 512, %s65_s27, [#allocation9], %s2213_s14, %s2213_s14, %s2214_s18  }
  0x27   :  { %s2090_s23 = scalar_lea.hbm %s2511_s0, 256 }
  0x28   :  { %p2091_p2 = scmp.ne.s32.totalorder %s2511_s0, %s2090_s23  ;;  %p2094_p3 = scmp.lt.u32.totalorder %s2090_s23, %s2511_s0 }
  0x2a   :  { %p2096_p4 = pnand %p2094_p3, %p2091_p2 }
  0x2c   :  { %2099 = shalt.err (!%p2096_p4)
}
  0x2d   :  { %s2100_s30 = scalar_lea.vmem %s27_s29, 256  ;;  %p2105_p6 = scmp.lt.s32.totalorder %s27_s29, %s27_s29 }
  0x2e   :  { %p2101_p5 = scmp.ne.s32.totalorder %s27_s29, %s2100_s30  ;;  %p2106_p7 = scmp.lt.s32.totalorder %s2100_s30, %s2100_s30 }
  0x30   :  { %p2107_p8 = por %p2106_p7, %p2105_p6 }
  0x32   :  { %p2108_p9 = pnand %p2107_p8, %p2101_p5 }
  0x34   :  { %2111 = shalt.err (!%p2108_p9)
}
  0x35   :  { %32 = dma.hbm_to_vmem [thread:$0]  %s2511_s0, 256, %s27_s29, [#allocation3], %s2213_s14, %s2213_s14, %s2214_s18  }
  0x36   :  { %s2215_s11 = smov [#allocation7]   ;;  %s2216_s13 = smov [#allocation10]  }
  0x37   :  { %s51_s12 = sshll.u32 %s2215_s11, 4  ;;  %s78_s15 = sshll.u32 %s2216_s13, 4  ;;  %s52_s12 = int_to_ptr.vmem [resolvable:$true] %s51_s12  ;;  %s79_s15 = int_to_ptr.vmem [resolvable:$true] %s78_s15 }
  0x38   :  { %s2112_s2 = scalar_lea.hbm %s2514_s3, 16 }
  0x39   :  { %p2113_p10 = scmp.ne.s32.totalorder %s2514_s3, %s2112_s2  ;;  %p2116_p11 = scmp.lt.u32.totalorder %s2112_s2, %s2514_s3 }
  0x3b   :  { %p2118_p12 = pnand %p2116_p11, %p2113_p10 }
  0x3d   :  { %2121 = shalt.err (!%p2118_p12)
}
  0x3e   :  { %s2122_s0 = scalar_lea.vmem %s52_s12, 16  ;;  %s2126_s29 = scalar_lea.vmem %s52_s12, 32 }
  0x3f   :  { %p2123_p13 = scmp.ne.s32.totalorder %s52_s12, %s2122_s0  ;;  %p2127_p0 = scmp.lt.s32.totalorder %s52_s12, %s52_s12 }
  0x40   :  { %p2128_p1 = scmp.lt.s32.totalorder %s2126_s29, %s2122_s0 }
  0x42   :  { %p2129_p2 = por %p2128_p1, %p2127_p0 }
  0x44   :  { %p2130_p3 = pnand %p2129_p2, %p2123_p13 }
  0x46   :  { %2133 = shalt.err (!%p2130_p3)
}
  0x47   :  { %54 = dma.hbm_to_vmem [thread:$0]  %s2514_s3, 16, %s52_s12, [#allocation6]  }
  0x48   :  { %s2134_s28 = scalar_lea.hbm %s2519_s8, 16384 }
  0x49   :  { %p2135_p4 = scmp.ne.s32.totalorder %s2519_s8, %s2134_s28  ;;  %p2138_p5 = scmp.lt.u32.totalorder %s2134_s28, %s2519_s8 }
  0x4b   :  { %p2140_p6 = pnand %p2138_p5, %p2135_p4 }
  0x4d   :  { %2143 = shalt.err (!%p2140_p6)
}
  0x4e   :  { %s2144_s13 = scalar_lea.vmem %s79_s15, 16384  ;;  %p2149_p8 = scmp.lt.s32.totalorder %s79_s15, %s79_s15 }
  0x4f   :  { %p2145_p7 = scmp.ne.s32.totalorder %s79_s15, %s2144_s13  ;;  %p2150_p9 = scmp.lt.s32.totalorder %s2144_s13, %s2144_s13 }
  0x51   :  { %p2151_p10 = por %p2150_p9, %p2149_p8 }
  0x53   :  { %p2152_p11 = pnand %p2151_p10, %p2145_p7 }
  0x55   :  { %2155 = shalt.err (!%p2152_p11)
}
  0x56   :  { %s2217_s3 = smov 4096   ;;  %s2218_s12 = smov 256  }
  0x57   :  { %84 = dma.hbm_to_vmem [thread:$0]  %s2519_s8, 16384, %s79_s15, [#allocation9], %s2217_s3, %s2217_s3, %s2218_s12  }
  0x58   :  { %2200 = dma.done.wait [#allocation3], 256  }
  0x59   :  { %2201 = vsyncadd [#allocation3], 4294967040 }
  0x5a   :  { %2202 = dma.done.wait [#allocation6], 32  }
  0x5b   :  { %2203 = vsyncadd [#allocation6], 4294967264 }
  0x5c   :  { %2204 = dma.done.wait [#allocation9], 16896  }
  0x5d   :  { %2205 = vsyncadd [#allocation9], 4294950400  ;;  %vm104_vm0 = vcmask 261120   ;;  %v100_v0 = vld [vmem:[#allocation2] sm:$0xff]  ;;  %v101_v1 = vld [vmem:[#allocation2 + $0x8] sm:$0xff]  ;;  %v2219_v29 = vmov 0  }
  0x5e   :  { %v105_v2 = vsel %vm104_vm0, %v100_v0, 0.0  ;;  %v108_v3 = vsel %vm104_vm0, %v101_v1, 0.0  ;;  %v150_v14 = vld [vmem:[%s2515_s4] sm:$0xff]  ;;  %v151_v15 = vld [vmem:[%s2515_s4 + $0x8] sm:$0xff]  ;;  %v254_v16 = vld [vmem:[#allocation8] sm:$0xff]  ;;  %2041 = vset.pattern.permute.xlu1 %v2219_v29  ;;  %2040 = vset.pattern.permute.xlu0 %v2219_v29 }
  0x5f   :  { %106 = vadd.xlane.f32.xlu0 %v105_v2  ;;  %v1883_v17 = vpack.c.bf16 %v151_v15, %v150_v14  ;;  %v255_v18 = vld [vmem:[#allocation8 + $0x8] sm:$0xff]  ;;  %v152_v19 = vld [vmem:[%s2515_s4 + $0x10] sm:$0xff]  ;;  %v256_v23 = vld [vmem:[#allocation8 + $0x10] sm:$0xff] }
  0x60   :  { %v153_v20 = vld [vmem:[%s2515_s4 + $0x18] sm:$0xff]  ;;  %v1891_v21 = vpack.c.bf16 %v255_v18, %v254_v16  ;;  %v257_v24 = vld [vmem:[#allocation8 + $0x18] sm:$0xff]  ;;  %v102_v27 = vld [vmem:[%s2512_s1] sm:$0xff] }
  0x61   :  { %v1887_v22 = vpack.c.bf16 %v153_v20, %v152_v19  ;;  %1884 = vmatprep.subr.bf16.mxu0 %v1883_v17  ;;  %v1895_v25 = vpack.c.bf16 %v257_v24, %v256_v23  ;;  %v103_v26 = vld [vmem:[%s2512_s1 + $0x8] sm:$0xff]  ;;  %v345_v28 = vld [vmem:[#allocation10 + $0x8] sm:$0xff]  ;;  %v1809_v42 = vld [vmem:[#allocation5] ss:$0 sm:$0xff] }
  0x62   :  { %1892 = vmatprep.subr.bf16.mxu1 %v1891_v21  ;;  %1886 = vmatpush3.bf16.msra.mxu0 %v1883_v17  ;;  %v377_v30 = vld [vmem:[#allocation10 + $0x108] sm:$0xff]  ;;  %v347_v31 = vld [vmem:[#allocation10 + $0x18] sm:$0xff]  ;;  %v344_v47 = vld [vmem:[#allocation10] sm:$0xff] }
  0x63   :  { %109 = vadd.xlane.f32.xlu0 %v108_v3  ;;  %1894 = vmatpush3.bf16.msra.mxu1 %v1891_v21  ;;  %v379_v32 = vld [vmem:[#allocation10 + $0x118] sm:$0xff]  ;;  %v1899_v33 = vpack.c.bf16 %v377_v30, %v345_v28  ;;  %v376_v50 = vld [vmem:[#allocation10 + $0x100] sm:$0xff]  ;;  %v346_v51 = vld [vmem:[#allocation10 + $0x10] sm:$0xff] }
  0x64   :  { %1888 = vmatprep.subr.bf16.mxu0 %v1887_v22  ;;  %1896 = vmatprep.subr.bf16.mxu1 %v1895_v25  ;;  %v1907_v34 = vpack.c.bf16 %v379_v32, %v347_v31  ;;  %v1810_v44 = vld [vmem:[#allocation7] ss:$0 sm:$0xff]  ;;  %v378_v52 = vld [vmem:[#allocation10 + $0x110] sm:$0xff]  ;;  %v1901_v54 = vpack.c.bf16 %v376_v50, %v344_v47  ;;  %v409_v57 = vld [vmem:[#allocation10 + $0x208] sm:$0xff] }
  0x65   :  { %v1909_v55 = vpack.c.bf16 %v378_v52, %v346_v51  ;;  %v441_v58 = vld [vmem:[#allocation10 + $0x308] sm:$0xff]  ;;  %v411_v59 = vld [vmem:[#allocation10 + $0x218] sm:$0xff]  ;;  %v408_v63 = vld [vmem:[#allocation10 + $0x200] sm:$0xff] }
  0x66   :  { %1890 = vmatpush3.bf16.msra.mxu0 %v1887_v22  ;;  %v1903_v60 = vpack.c.bf16 %v441_v58, %v409_v57  ;;  %v443_v61 = vld [vmem:[#allocation10 + $0x318] sm:$0xff]  ;;  %v442_v3 = vld [vmem:[#allocation10 + $0x310] sm:$0xff]  ;;  %v348_v16 = vld [vmem:[#allocation10 + $0x20] sm:$0xff] }
  0x67   :  { %1898 = vmatpush3.bf16.msra.mxu1 %v1895_v25  ;;  %1900 = vmatprep.subr.bf16.mxu0 %v1899_v33  ;;  %v1911_v62 = vpack.c.bf16 %v443_v61, %v411_v59  ;;  %v380_v19 = vld [vmem:[#allocation10 + $0x120] sm:$0xff]  ;;  %v350_v20 = vld [vmem:[#allocation10 + $0x30] sm:$0xff]  ;;  %v413_v25 = vld [vmem:[#allocation10 + $0x228] sm:$0xff] }
  0x68   :  { %1908 = vmatprep.subr.bf16.mxu1 %v1907_v34  ;;  %v382_v21 = vld [vmem:[#allocation10 + $0x130] sm:$0xff]  ;;  %v445_v28 = vld [vmem:[#allocation10 + $0x328] sm:$0xff]  ;;  %v415_v29 = vld [vmem:[#allocation10 + $0x238] sm:$0xff]  ;;  %v1917_v32 = vpack.c.bf16 %v380_v19, %v348_v16 }
  0x69   :  { %v447_v30 = vld [vmem:[#allocation10 + $0x338] sm:$0xff]  ;;  %v1925_v33 = vpack.c.bf16 %v382_v21, %v350_v20  ;;  %v412_v34 = vld [vmem:[#allocation10 + $0x220] sm:$0xff]  ;;  %v354_v52 = vld [vmem:[#allocation10 + $0x50] sm:$0xff] }
  0x6a   :  { %v384_v51 = vld [vmem:[#allocation10 + $0x140] sm:$0xff]  ;;  %v449_v57 = vld [vmem:[#allocation10 + $0x348] sm:$0xff]  ;;  %v419_v58 = vld [vmem:[#allocation10 + $0x258] sm:$0xff] }
  0x6b   :  { %v451_v59 = vld [vmem:[#allocation10 + $0x358] sm:$0xff] }
  0x6c   :  { %v423_v19 = vld [vmem:[#allocation10 + $0x278] sm:$0xff] }
  0x6d   :  { %v455_v20 = vld [vmem:[#allocation10 + $0x378] sm:$0xff] }
  0x79   :  { %244 = vperm.xlu0 %2040, %v102_v27  }
  0xec   :  { %v107_v4 = vpop.xlane.xlu0 %106 }
  0xed   :  { %v112_v5 = vmul.f32 0.03125, %v107_v4 }
  0xef   :  { %v114_v6 = vsub.f32 %v100_v0, %v112_v5  ;;  %v440_v0 = vld [vmem:[#allocation10 + $0x300] sm:$0xff]  ;;  %v349_v5 = vld [vmem:[#allocation10 + $0x28] sm:$0xff] }
  0xf0   :  { %v110_v7 = vpop.xlane.xlu0 %109  ;;  %v1905_v2 = vpack.c.bf16 %v440_v0, %v408_v63  ;;  %v448_v63 = vld [vmem:[#allocation10 + $0x340] sm:$0xff]  ;;  %v418_v0 = vld [vmem:[#allocation10 + $0x250] sm:$0xff] }
  0xf1   :  { %v113_v8 = vmul.f32 0.03125, %v110_v7  ;;  %v116_v9 = vmul.f32 %v114_v6, %v114_v6  ;;  %v351_v7 = vld [vmem:[#allocation10 + $0x38] sm:$0xff] }
  0xf3   :  { %v115_v10 = vsub.f32 %v101_v1, %v113_v8  ;;  %v118_v11 = vsel %vm104_vm0, %v116_v9, 0.0  ;;  %v410_v1 = vld [vmem:[#allocation10 + $0x210] sm:$0xff]  ;;  %v383_v9 = vld [vmem:[#allocation10 + $0x138] sm:$0xff] }
  0xf4   :  { %119 = vadd.xlane.f32.xlu1 %v118_v11  ;;  %v1913_v4 = vpack.c.bf16 %v442_v3, %v410_v1  ;;  %v1923_v11 = vpack.c.bf16 %v383_v9, %v351_v7  ;;  %v450_v1 = vld [vmem:[#allocation10 + $0x350] sm:$0xff]  ;;  %v1943_v3 = vpack.c.bf16 %v451_v59, %v419_v58  ;;  %v391_v7 = vld [vmem:[#allocation10 + $0x178] sm:$0xff] }
  0xf5   :  { %v117_v12 = vmul.f32 %v115_v10, %v115_v10  ;;  %v1945_v9 = vpack.c.bf16 %v450_v1, %v418_v0  ;;  %v399_v58 = vld [vmem:[#allocation10 + $0x1b8] sm:$0xff]  ;;  %v398_v0 = vld [vmem:[#allocation10 + $0x1b0] sm:$0xff] }
  0xf7   :  { %v121_v13 = vsel %vm104_vm0, %v117_v12, 0.0  ;;  %v1811_v12 = vld [vmem:[%s2516_s5] ss:$0 sm:$0xff]  ;;  %s2221_s5 = smov [#allocation11]  }
  0xf8   :  { %122 = vadd.xlane.f32.xlu1 %v121_v13  ;;  %v1814_v13 = vld [vmem:[%s2518_s7] ss:$0 sm:$0xff]  ;;  %v245_v15 = vpop.permute.xlu0 %244  ;;  %s1779_s7 = sshll.u32 %s2221_s5, 4  ;;  %s1780_s7 = int_to_ptr.vmem [resolvable:$true] %s1779_s7 }
  0xf9   :  { %s2156_s30 = scalar_lea.vmem %s1780_s7, 256  ;;  %p2161_p13 = scmp.lt.s32.totalorder %s1780_s7, %s1780_s7 }
  0xfa   :  { %p2157_p12 = scmp.ne.s32.totalorder %s1780_s7, %s2156_s30  ;;  %p2162_p0 = scmp.lt.s32.totalorder %s2156_s30, %s2156_s30 }
  0xfc   :  { %p2163_p1 = por %p2162_p0, %p2161_p13 }
  0xfe   :  { %p2164_p2 = pnand %p2163_p1, %p2157_p12 }
 0x109   :  { %249 = vperm.xlu1 %2041, %v103_v26  }
 0x181   :  { %v120_v35 = vpop.xlane.xlu1 %119 }
 0x182   :  { %v124_v36 = vmul.f32 0.03125, %v120_v35 }
 0x184   :  { %v126_v37 = vadd.f32 1e-05, %v124_v36 }
 0x185   :  { %v123_v38 = vpop.xlane.xlu1 %122 }
 0x186   :  { %2042 = vrsqrt.f32 %v126_v37  ;;  %v125_v39 = vmul.f32 0.03125, %v123_v38  ;;  %v444_v38 = vld [vmem:[#allocation10 + $0x320] sm:$0xff] }
 0x187   :  { %v1921_v47 = vpack.c.bf16 %v444_v38, %v412_v34  ;;  %v362_v38 = vld [vmem:[#allocation10 + $0x90] sm:$0xff] }
 0x188   :  { %v127_v40 = vadd.f32 1e-05, %v125_v39  ;;  %v414_v39 = vld [vmem:[#allocation10 + $0x230] sm:$0xff] }
 0x189   :  { %v250_v14 = vpop.permute.xlu1 %249 }
 0x18a   :  { %2044 = vrsqrt.f32 %v127_v40  ;;  %v446_v40 = vld [vmem:[#allocation10 + $0x330] sm:$0xff] }
 0x190   :  { %v2043_v41 = vpop.eup %2042 }
 0x191   :  { %v130_v43 = vmul.f32 %v2043_v41, %v114_v6  ;;  %v381_v6 = vld [vmem:[#allocation10 + $0x128] sm:$0xff]  ;;  %v1919_v41 = vpack.c.bf16 %v445_v28, %v413_v25  ;;  %v422_v25 = vld [vmem:[#allocation10 + $0x270] sm:$0xff]  ;;  %v1959_v28 = vpack.c.bf16 %v455_v20, %v423_v19  ;;  %v403_v19 = vld [vmem:[#allocation10 + $0x1d8] sm:$0xff] }
 0x192   :  { %v1915_v8 = vpack.c.bf16 %v381_v6, %v349_v5  ;;  %v389_v5 = vld [vmem:[#allocation10 + $0x168] sm:$0xff]  ;;  %v359_v6 = vld [vmem:[#allocation10 + $0x78] sm:$0xff] }
 0x193   :  { %v139_v45 = vmul.f32 %v1809_v42, %v130_v43  ;;  %v353_v43 = vld [vmem:[#allocation10 + $0x48] sm:$0xff]  ;;  %v1955_v16 = vpack.c.bf16 %v391_v7, %v359_v6  ;;  %v463_v6 = vld [vmem:[#allocation10 + $0x3b8] sm:$0xff] }
 0x194   :  { %v2045_v46 = vpop.eup %2044 }
 0x195   :  { %v131_v48 = vmul.f32 %v2045_v46, %v115_v10  ;;  %v148_v49 = vadd.f32 %v1810_v44, %v139_v45  ;;  %v2220_v10 = vmov 0.0   ;;  %v355_v45 = vld [vmem:[#allocation10 + $0x58] sm:$0xff] }
 0x196   :  { %v387_v46 = vld [vmem:[#allocation10 + $0x158] sm:$0xff] }
 0x197   :  { %v140_v53 = vmul.f32 %v1809_v42, %v131_v48  ;;  %1869 = vmatprep.mubr.msk.f32.mxu0 %vm104_vm0, %v148_v49  ;;  %1880 = vmatprep.mubr.msk.f32.mxu1 %vm104_vm0, %v148_v49  ;;  %v1927_v42 = vpack.c.bf16 %v447_v30, %v415_v29  ;;  %v1929_v48 = vpack.c.bf16 %v446_v40, %v414_v39  ;;  %v352_v49 = vld [vmem:[#allocation10 + $0x40] sm:$0xff]  ;;  %v361_v29 = vld [vmem:[#allocation10 + $0x88] sm:$0xff]  ;;  %v394_v39 = vld [vmem:[#allocation10 + $0x190] sm:$0xff] }
 0x198   :  { %v393_v30 = vld [vmem:[#allocation10 + $0x188] sm:$0xff] }
 0x199   :  { %v149_v56 = vadd.f32 %v1810_v44, %v140_v53  ;;  %v385_v44 = vld [vmem:[#allocation10 + $0x148] sm:$0xff]  ;;  %v386_v53 = vld [vmem:[#allocation10 + $0x150] sm:$0xff]  ;;  %v1963_v40 = vpack.c.bf16 %v393_v30, %v361_v29  ;;  %v435_v30 = vld [vmem:[#allocation10 + $0x2d8] sm:$0xff] }
 0x19a   :  { %v1941_v61 = vpack.c.bf16 %v386_v53, %v354_v52  ;;  %v458_v52 = vld [vmem:[#allocation10 + $0x390] sm:$0xff]  ;;  %v465_v29 = vld [vmem:[#allocation10 + $0x3c8] sm:$0xff] }
 0x19b   :  { %1870 = vmatmul.mubr.msk.f32.vlgmr.msra.gmra.mrb[0].mxu0 %vm104_vm0, %v149_v56  ;;  %1881 = vmatmul.mubr.msk.f32.vlgmr.msra.gmra.mrb[0].mxu1 %vm104_vm0, %v149_v56  ;;  %v417_v56 = vld [vmem:[#allocation10 + $0x248] sm:$0xff] }
 0x19c   :  { %1902 = vmatpush1.bf16.msra.mxu0 %v1901_v54  ;;  %1910 = vmatpush1.bf16.msra.mxu1 %v1909_v55  ;;  %v1931_v54 = vpack.c.bf16 %v385_v44, %v353_v43  ;;  %v1939_v55 = vpack.c.bf16 %v387_v46, %v355_v45  ;;  %v457_v43 = vld [vmem:[#allocation10 + $0x388] sm:$0xff]  ;;  %v427_v44 = vld [vmem:[#allocation10 + $0x298] sm:$0xff] }
 0x19d   :  { %1904 = vmatprep.subr.bf16.mxu0 %v1903_v60  ;;  %1912 = vmatprep.subr.bf16.mxu1 %v1911_v62  ;;  %v1933_v60 = vpack.c.bf16 %v384_v51, %v352_v49  ;;  %v416_v62 = vld [vmem:[#allocation10 + $0x240] sm:$0xff]  ;;  %v459_v45 = vld [vmem:[#allocation10 + $0x398] sm:$0xff]  ;;  %v426_v51 = vld [vmem:[#allocation10 + $0x290] sm:$0xff] }
 0x19e   :  { %542 = vmatprep.mubr.f32.mxu0 %v2220_v10  ;;  %619 = vmatprep.mubr.f32.mxu1 %v2220_v10  ;;  %v456_v49 = vld [vmem:[#allocation10 + $0x380] sm:$0xff] }
 0x1a0   :  { %1906 = vmatpush1.bf16.msra.mxu0 %v1905_v2  ;;  %1914 = vmatpush1.bf16.msra.mxu1 %v1913_v4  ;;  %v1935_v2 = vpack.c.bf16 %v449_v57, %v417_v56  ;;  %v357_v4 = vld [vmem:[#allocation10 + $0x68] sm:$0xff]  ;;  %v367_v57 = vld [vmem:[#allocation10 + $0xb8] sm:$0xff] }
 0x1a1   :  { %1916 = vmatprep.subr.bf16.mxu0 %v1915_v8  ;;  %1924 = vmatprep.subr.bf16.mxu1 %v1923_v11  ;;  %v1937_v8 = vpack.c.bf16 %v448_v63, %v416_v62  ;;  %v356_v11 = vld [vmem:[#allocation10 + $0x60] sm:$0xff]  ;;  %v397_v56 = vld [vmem:[#allocation10 + $0x1a8] sm:$0xff]  ;;  %v366_v63 = vld [vmem:[#allocation10 + $0xb0] sm:$0xff] }
 0x1a2   :  { %v396_v62 = vld [vmem:[#allocation10 + $0x1a0] sm:$0xff] }
 0x26e   :  { %v1871_v17 = vpop.f32.mrb[0].mxu0  ;;  %v1882_v18 = vpop.f32.mrb[0].mxu1 }
 0x26f   :  { %v239_v22 = vadd.f32 %v1871_v17, %v1811_v12  ;;  %v233_v23 = vpop.f32.mrb[1].mxu0  ;;  %v331_v24 = vpop.f32.mrb[1].mxu1  ;;  %v337_v35 = vadd.f32 %v1882_v18, %v1814_v13  ;;  %v421_v17 = vld [vmem:[#allocation10 + $0x268] sm:$0xff] }
 0x270   :  { %v234_v26 = vadd.f32 %v1811_v12, %v233_v23  ;;  %v332_v27 = vadd.f32 %v1814_v13, %v331_v24  ;;  %v388_v12 = vld [vmem:[#allocation10 + $0x160] sm:$0xff]  ;;  %v358_v13 = vld [vmem:[#allocation10 + $0x70] sm:$0xff]  ;;  %v453_v18 = vld [vmem:[#allocation10 + $0x368] sm:$0xff] }
 0x271   :  { %v253_v31 = vmul.f32 %v250_v14, %v239_v22  ;;  %v2389_v50 = vmul.f32 %v337_v35, %v250_v14  ;;  %v390_v14 = vld [vmem:[#allocation10 + $0x170] sm:$0xff]  ;;  %v1949_v21 = vpack.c.bf16 %v388_v12, %v356_v11  ;;  %v420_v23 = vld [vmem:[#allocation10 + $0x260] sm:$0xff] }
 0x272   :  { %v252_v36 = vmul.f32 %v245_v15, %v234_v26  ;;  %v2381_v37 = vmul.f32 %v332_v27, %v245_v15  ;;  %v1947_v15 = vpack.c.bf16 %v389_v5, %v357_v4  ;;  %v1957_v22 = vpack.c.bf16 %v390_v14, %v358_v13  ;;  %v452_v24 = vld [vmem:[#allocation10 + $0x360] sm:$0xff]  ;;  %v454_v26 = vld [vmem:[#allocation10 + $0x370] sm:$0xff]  ;;  %v461_v4 = vld [vmem:[#allocation10 + $0x3a8] sm:$0xff] }
 0x273   :  { %343 = vst.msk [vmem:[#allocation11 + $0x8] sm:$0xff] %vm104_vm0, %v253_v31  ;;  %v1951_v27 = vpack.c.bf16 %v453_v18, %v421_v17  ;;  %v363_v31 = vld [vmem:[#allocation10 + $0x98] sm:$0xff]  ;;  %v1961_v34 = vpack.c.bf16 %v454_v26, %v422_v25  ;;  %v360_v35 = vld [vmem:[#allocation10 + $0x80] sm:$0xff]  ;;  %v430_v12 = vld [vmem:[#allocation10 + $0x2b0] sm:$0xff] }
 0x274   :  { %342 = vst.msk [vmem:[#allocation11] sm:$0xff] %vm104_vm0, %v252_v36  ;;  %1817 = vmatmul.mubr.msk.f32.vlgmr.msra.gmra.mrb[2].mxu0 %vm104_vm0, %v2381_v37  ;;  %1819 = vmatmul.mubr.msk.f32.vlgmr.msra.gmra.mrb[2].mxu1 %vm104_vm0, %v2381_v37  ;;  %v392_v36 = vld [vmem:[#allocation10 + $0x180] sm:$0xff]  ;;  %v431_v5 = vld [vmem:[#allocation10 + $0x2b8] sm:$0xff]  ;;  %v462_v13 = vld [vmem:[#allocation10 + $0x3b0] sm:$0xff] }
 0x275   :  { %1918 = vmatpush1.bf16.msra.mxu0 %v1917_v32  ;;  %1926 = vmatpush1.bf16.msra.mxu1 %v1925_v33  ;;  %v395_v32 = vld [vmem:[#allocation10 + $0x198] sm:$0xff]  ;;  %v1953_v33 = vpack.c.bf16 %v452_v24, %v420_v23  ;;  %v1965_v46 = vpack.c.bf16 %v392_v36, %v360_v35  ;;  %v460_v11 = vld [vmem:[#allocation10 + $0x3a0] sm:$0xff]  ;;  %v401_v17 = vld [vmem:[#allocation10 + $0x1c8] sm:$0xff] }
 0x276   :  { %548 = vmatprep.mubr.f32.mxu0 %v2220_v10  ;;  %625 = vmatprep.mubr.f32.mxu1 %v2220_v10  ;;  %v371_v18 = vld [vmem:[#allocation10 + $0xd8] sm:$0xff]  ;;  %v400_v23 = vld [vmem:[#allocation10 + $0x1c0] sm:$0xff]  ;;  %v370_v24 = vld [vmem:[#allocation10 + $0xd0] sm:$0xff] }
 0x277   :  { %1920 = vmatprep.subr.bf16.mxu0 %v1919_v41  ;;  %1928 = vmatprep.subr.bf16.mxu1 %v1927_v42  ;;  %v1971_v41 = vpack.c.bf16 %v395_v32, %v363_v31  ;;  %v425_v42 = vld [vmem:[#allocation10 + $0x288] sm:$0xff]  ;;  %v402_v25 = vld [vmem:[#allocation10 + $0x1d0] sm:$0xff]  ;;  %v467_v31 = vld [vmem:[#allocation10 + $0x3d8] sm:$0xff] }
 0x278   :  { %1818 = vmatmul.mubr.msk.f32.gmra.mrb[4].mxu0 %vm104_vm0, %v2389_v50  ;;  %1820 = vmatmul.mubr.msk.f32.gmra.mrb[4].mxu1 %vm104_vm0, %v2389_v50  ;;  %v1967_v53 = vpack.c.bf16 %v457_v43, %v425_v42  ;;  %v464_v35 = vld [vmem:[#allocation10 + $0x3c0] sm:$0xff]  ;;  %v434_v36 = vld [vmem:[#allocation10 + $0x2d0] sm:$0xff]  ;;  %v405_v42 = vld [vmem:[#allocation10 + $0x1e8] sm:$0xff] }
 0x279   :  { %1922 = vmatpush1.bf16.msra.mxu0 %v1921_v47  ;;  %1930 = vmatpush1.bf16.msra.mxu1 %v1929_v48  ;;  %v1973_v47 = vpack.c.bf16 %v394_v39, %v362_v38  ;;  %v424_v48 = vld [vmem:[#allocation10 + $0x280] sm:$0xff]  ;;  %v466_v38 = vld [vmem:[#allocation10 + $0x3d0] sm:$0xff]  ;;  %v375_v43 = vld [vmem:[#allocation10 + $0xf8] sm:$0xff] }
 0x27a   :  { %696 = vmatprep.mubr.f32.mxu0 %v2220_v10  ;;  %773 = vmatprep.mubr.f32.mxu1 %v2220_v10  ;;  %v1969_v59 = vpack.c.bf16 %v456_v49, %v424_v48  ;;  %v404_v48 = vld [vmem:[#allocation10 + $0x1e0] sm:$0xff]  ;;  %v374_v49 = vld [vmem:[#allocation10 + $0xf0] sm:$0xff] }
 0x27b   :  { %1932 = vmatprep.subr.bf16.mxu0 %v1931_v54  ;;  %1940 = vmatprep.subr.bf16.mxu1 %v1939_v55  ;;  %v1975_v54 = vpack.c.bf16 %v459_v45, %v427_v44  ;;  %v365_v55 = vld [vmem:[#allocation10 + $0xa8] sm:$0xff]  ;;  %v407_v44 = vld [vmem:[#allocation10 + $0x1f8] sm:$0xff] }
 0x27c   :  { %1821 = vmatmul.mubr.msk.f32.vlgmr.msra.gmra.mrb[6].mxu0 %vm104_vm0, %v2381_v37  ;;  %1823 = vmatmul.mubr.msk.f32.vlgmr.msra.gmra.mrb[6].mxu1 %vm104_vm0, %v2381_v37  ;;  %v1979_v1 = vpack.c.bf16 %v397_v56, %v365_v55  ;;  %v469_v55 = vld [vmem:[#allocation10 + $0x3e8] sm:$0xff]  ;;  %v439_v56 = vld [vmem:[#allocation10 + $0x2f8] sm:$0xff] }
 0x27d   :  { %1934 = vmatpush1.bf16.msra.mxu0 %v1933_v60  ;;  %1942 = vmatpush1.bf16.msra.mxu1 %v1941_v61  ;;  %v1977_v60 = vpack.c.bf16 %v458_v52, %v426_v51  ;;  %v364_v61 = vld [vmem:[#allocation10 + $0xa0] sm:$0xff]  ;;  %v406_v51 = vld [vmem:[#allocation10 + $0x1f0] sm:$0xff] }
 0x27e   :  { %702 = vmatprep.mubr.f32.mxu0 %v2220_v10  ;;  %779 = vmatprep.mubr.f32.mxu1 %v2220_v10  ;;  %v1981_v7 = vpack.c.bf16 %v396_v62, %v364_v61  ;;  %v468_v61 = vld [vmem:[#allocation10 + $0x3e0] sm:$0xff]  ;;  %v438_v62 = vld [vmem:[#allocation10 + $0x2f0] sm:$0xff] }
 0x27f   :  { %1936 = vmatprep.subr.bf16.mxu0 %v1935_v2  ;;  %1944 = vmatprep.subr.bf16.mxu1 %v1943_v3  ;;  %v1987_v2 = vpack.c.bf16 %v399_v58, %v367_v57  ;;  %v429_v3 = vld [vmem:[#allocation10 + $0x2a8] sm:$0xff]  ;;  %v471_v57 = vld [vmem:[#allocation10 + $0x3f8] sm:$0xff] }
 0x280   :  { %1822 = vmatmul.mubr.msk.f32.gmra.mrb[8].mxu0 %vm104_vm0, %v2389_v50  ;;  %1824 = vmatmul.mubr.msk.f32.gmra.mrb[8].mxu1 %vm104_vm0, %v2389_v50  ;;  %v1983_v14 = vpack.c.bf16 %v461_v4, %v429_v3 }
 0x281   :  { %1938 = vmatpush1.bf16.msra.mxu0 %v1937_v8  ;;  %1946 = vmatpush1.bf16.msra.mxu1 %v1945_v9  ;;  %v1989_v8 = vpack.c.bf16 %v398_v0, %v366_v63  ;;  %v428_v9 = vld [vmem:[#allocation10 + $0x2a0] sm:$0xff]  ;;  %v470_v63 = vld [vmem:[#allocation10 + $0x3f0] sm:$0xff] }
 0x282   :  { %850 = vmatprep.mubr.f32.mxu0 %v2220_v10  ;;  %927 = vmatprep.mubr.f32.mxu1 %v2220_v10  ;;  %v1985_v20 = vpack.c.bf16 %v460_v11, %v428_v9  ;;  %v2025_v3 = vpack.c.bf16 %v470_v63, %v438_v62 }
 0x283   :  { %1948 = vmatprep.subr.bf16.mxu0 %v1947_v15  ;;  %1956 = vmatprep.subr.bf16.mxu1 %v1955_v16  ;;  %v1991_v15 = vpack.c.bf16 %v463_v6, %v431_v5  ;;  %v369_v16 = vld [vmem:[#allocation10 + $0xc8] sm:$0xff] }
 0x284   :  { %1825 = vmatmul.mubr.msk.f32.vlgmr.msra.gmra.mrb[10].mxu0 %vm104_vm0, %v2381_v37  ;;  %1827 = vmatmul.mubr.msk.f32.vlgmr.msra.gmra.mrb[10].mxu1 %vm104_vm0, %v2381_v37  ;;  %v1995_v26 = vpack.c.bf16 %v401_v17, %v369_v16 }
 0x285   :  { %1950 = vmatpush1.bf16.msra.mxu0 %v1949_v21  ;;  %1958 = vmatpush1.bf16.msra.mxu1 %v1957_v22  ;;  %v1993_v21 = vpack.c.bf16 %v462_v13, %v430_v12  ;;  %v368_v22 = vld [vmem:[#allocation10 + $0xc0] sm:$0xff] }
 0x286   :  { %856 = vmatprep.mubr.f32.mxu0 %v2220_v10  ;;  %933 = vmatprep.mubr.f32.mxu1 %v2220_v10  ;;  %v1997_v32 = vpack.c.bf16 %v400_v23, %v368_v22 }
 0x287   :  { %1952 = vmatprep.subr.bf16.mxu0 %v1951_v27  ;;  %1960 = vmatprep.subr.bf16.mxu1 %v1959_v28  ;;  %v2003_v27 = vpack.c.bf16 %v403_v19, %v371_v18  ;;  %v433_v28 = vld [vmem:[#allocation10 + $0x2c8] sm:$0xff] }
 0x288   :  { %1826 = vmatmul.mubr.msk.f32.gmra.mrb[12].mxu0 %vm104_vm0, %v2389_v50  ;;  %1828 = vmatmul.mubr.msk.f32.gmra.mrb[12].mxu1 %vm104_vm0, %v2389_v50  ;;  %v1999_v39 = vpack.c.bf16 %v465_v29, %v433_v28 }
 0x289   :  { %1954 = vmatpush1.bf16.msra.mxu0 %v1953_v33  ;;  %1962 = vmatpush1.bf16.msra.mxu1 %v1961_v34  ;;  %v2005_v33 = vpack.c.bf16 %v402_v25, %v370_v24  ;;  %v432_v34 = vld [vmem:[#allocation10 + $0x2c0] sm:$0xff] }
 0x28a   :  { %1004 = vmatprep.mubr.f32.mxu0 %v2220_v10  ;;  %1081 = vmatprep.mubr.f32.mxu1 %v2220_v10  ;;  %v2001_v45 = vpack.c.bf16 %v464_v35, %v432_v34 }
 0x28b   :  { %1964 = vmatprep.subr.bf16.mxu0 %v1963_v40  ;;  %1972 = vmatprep.subr.bf16.mxu1 %v1971_v41  ;;  %v2007_v40 = vpack.c.bf16 %v467_v31, %v435_v30  ;;  %v373_v41 = vld [vmem:[#allocation10 + $0xe8] sm:$0xff] }
 0x28c   :  { %1829 = vmatmul.mubr.msk.f32.vlgmr.msra.gmra.mrb[14].mxu0 %vm104_vm0, %v2381_v37  ;;  %1831 = vmatmul.mubr.msk.f32.vlgmr.msra.gmra.mrb[14].mxu1 %vm104_vm0, %v2381_v37  ;;  %v2011_v52 = vpack.c.bf16 %v405_v42, %v373_v41 }
 0x28d   :  { %1966 = vmatpush1.bf16.msra.mxu0 %v1965_v46  ;;  %1974 = vmatpush1.bf16.msra.mxu1 %v1973_v47  ;;  %v2009_v46 = vpack.c.bf16 %v466_v38, %v434_v36  ;;  %v372_v47 = vld [vmem:[#allocation10 + $0xe0] sm:$0xff] }
 0x28e   :  { %1010 = vmatprep.mubr.f32.mxu0 %v2220_v10  ;;  %1087 = vmatprep.mubr.f32.mxu1 %v2220_v10  ;;  %v2013_v58 = vpack.c.bf16 %v404_v48, %v372_v47 }
 0x28f   :  { %1968 = vmatprep.subr.bf16.mxu0 %v1967_v53  ;;  %1976 = vmatprep.subr.bf16.mxu1 %v1975_v54  ;;  %v2019_v53 = vpack.c.bf16 %v407_v44, %v375_v43  ;;  %v437_v54 = vld [vmem:[#allocation10 + $0x2e8] sm:$0xff] }
 0x290   :  { %1830 = vmatmul.mubr.msk.f32.gmra.mrb[16].mxu0 %vm104_vm0, %v2389_v50  ;;  %1832 = vmatmul.mubr.msk.f32.gmra.mrb[16].mxu1 %vm104_vm0, %v2389_v50  ;;  %v2015_v0 = vpack.c.bf16 %v469_v55, %v437_v54 }
 0x291   :  { %1970 = vmatpush1.bf16.msra.mxu0 %v1969_v59  ;;  %1978 = vmatpush1.bf16.msra.mxu1 %v1977_v60  ;;  %v2021_v59 = vpack.c.bf16 %v406_v51, %v374_v49  ;;  %v436_v60 = vld [vmem:[#allocation10 + $0x2e0] sm:$0xff] }
 0x292   :  { %1158 = vmatprep.mubr.f32.mxu0 %v2220_v10  ;;  %1235 = vmatprep.mubr.f32.mxu1 %v2220_v10 }
 0x293   :  { %1980 = vmatprep.subr.bf16.mxu0 %v1979_v1  ;;  %1988 = vmatprep.subr.bf16.mxu1 %v1987_v2  ;;  %v2023_v1 = vpack.c.bf16 %v471_v57, %v439_v56  ;;  %v2017_v2 = vpack.c.bf16 %v468_v61, %v436_v60 }
 0x294   :  { %1833 = vmatmul.mubr.msk.f32.vlgmr.msra.gmra.mrb[18].mxu0 %vm104_vm0, %v2381_v37  ;;  %1835 = vmatmul.mubr.msk.f32.vlgmr.msra.gmra.mrb[18].mxu1 %vm104_vm0, %v2381_v37 }
 0x295   :  { %1982 = vmatpush1.bf16.msra.mxu0 %v1981_v7  ;;  %1990 = vmatpush1.bf16.msra.mxu1 %v1989_v8 }
 0x296   :  { %1164 = vmatprep.mubr.f32.mxu0 %v2220_v10  ;;  %1241 = vmatprep.mubr.f32.mxu1 %v2220_v10 }
 0x297   :  { %1984 = vmatprep.subr.bf16.mxu0 %v1983_v14  ;;  %1992 = vmatprep.subr.bf16.mxu1 %v1991_v15 }
 0x298   :  { %1834 = vmatmul.mubr.msk.f32.gmra.mrb[20].mxu0 %vm104_vm0, %v2389_v50  ;;  %1836 = vmatmul.mubr.msk.f32.gmra.mrb[20].mxu1 %vm104_vm0, %v2389_v50 }
 0x299   :  { %1986 = vmatpush1.bf16.msra.mxu0 %v1985_v20  ;;  %1994 = vmatpush1.bf16.msra.mxu1 %v1993_v21 }
 0x29a   :  { %1312 = vmatprep.mubr.f32.mxu0 %v2220_v10  ;;  %1389 = vmatprep.mubr.f32.mxu1 %v2220_v10 }
 0x29b   :  { %1996 = vmatprep.subr.bf16.mxu0 %v1995_v26  ;;  %2004 = vmatprep.subr.bf16.mxu1 %v2003_v27 }
 0x29c   :  { %1837 = vmatmul.mubr.msk.f32.vlgmr.msra.gmra.mrb[22].mxu0 %vm104_vm0, %v2381_v37  ;;  %1839 = vmatmul.mubr.msk.f32.vlgmr.msra.gmra.mrb[22].mxu1 %vm104_vm0, %v2381_v37 }
 0x29d   :  { %1998 = vmatpush1.bf16.msra.mxu0 %v1997_v32  ;;  %2006 = vmatpush1.bf16.msra.mxu1 %v2005_v33 }
 0x29e   :  { %1318 = vmatprep.mubr.f32.mxu0 %v2220_v10  ;;  %1395 = vmatprep.mubr.f32.mxu1 %v2220_v10 }
 0x29f   :  { %2000 = vmatprep.subr.bf16.mxu0 %v1999_v39  ;;  %2008 = vmatprep.subr.bf16.mxu1 %v2007_v40 }
 0x2a0   :  { %1838 = vmatmul.mubr.msk.f32.gmra.mrb[24].mxu0 %vm104_vm0, %v2389_v50  ;;  %1840 = vmatmul.mubr.msk.f32.gmra.mrb[24].mxu1 %vm104_vm0, %v2389_v50 }
 0x2a1   :  { %2002 = vmatpush1.bf16.msra.mxu0 %v2001_v45  ;;  %2010 = vmatpush1.bf16.msra.mxu1 %v2009_v46 }
 0x2a2   :  { %1466 = vmatprep.mubr.f32.mxu0 %v2220_v10  ;;  %1543 = vmatprep.mubr.f32.mxu1 %v2220_v10 }
 0x2a3   :  { %2012 = vmatprep.subr.bf16.mxu0 %v2011_v52  ;;  %2020 = vmatprep.subr.bf16.mxu1 %v2019_v53 }
 0x2a4   :  { %1841 = vmatmul.mubr.msk.f32.vlgmr.msra.gmra.mrb[26].mxu0 %vm104_vm0, %v2381_v37  ;;  %1843 = vmatmul.mubr.msk.f32.vlgmr.msra.gmra.mrb[26].mxu1 %vm104_vm0, %v2381_v37 }
 0x2a5   :  { %2014 = vmatpush1.bf16.msra.mxu0 %v2013_v58  ;;  %2022 = vmatpush1.bf16.msra.mxu1 %v2021_v59 }
 0x2a6   :  { %1472 = vmatprep.mubr.f32.mxu0 %v2220_v10  ;;  %1549 = vmatprep.mubr.f32.mxu1 %v2220_v10 }
 0x2a7   :  { %2016 = vmatprep.subr.bf16.mxu0 %v2015_v0  ;;  %2024 = vmatprep.subr.bf16.mxu1 %v2023_v1 }
 0x2a8   :  { %1842 = vmatmul.mubr.msk.f32.gmra.mrb[28].mxu0 %vm104_vm0, %v2389_v50  ;;  %1844 = vmatmul.mubr.msk.f32.gmra.mrb[28].mxu1 %vm104_vm0, %v2389_v50 }
 0x2a9   :  { %2018 = vmatpush1.bf16.msra.mxu0 %v2017_v2  ;;  %2026 = vmatpush1.bf16.msra.mxu1 %v2025_v3 }
 0x2aa   :  { %1620 = vmatprep.mubr.f32.mxu0 %v2220_v10  ;;  %1697 = vmatprep.mubr.f32.mxu1 %v2220_v10 }
 0x2ac   :  { %1845 = vmatmul.mubr.msk.f32.vlgmr.msra.gmra.mrb[30].mxu0 %vm104_vm0, %v2381_v37  ;;  %1847 = vmatmul.mubr.msk.f32.vlgmr.msra.gmra.mrb[30].mxu1 %vm104_vm0, %v2381_v37 }
 0x2ad   :  { %1626 = vmatprep.mubr.f32.mxu0 %v2220_v10  ;;  %1703 = vmatprep.mubr.f32.mxu1 %v2220_v10 }
 0x2b0   :  { %1846 = vmatmul.mubr.msk.f32.gmra.mrb[32].mxu0 %vm104_vm0, %v2389_v50  ;;  %1848 = vmatmul.mubr.msk.f32.gmra.mrb[32].mxu1 %vm104_vm0, %v2389_v50 }
 0x2b1   :  { %2167 = shalt.err (!%p2164_p2)
}
 0x2b2   :  { %s2168_s11 = scalar_lea.hbm %s2520_s9, 256 }
 0x2b3   :  { %p2169_p3 = scmp.ne.s32.totalorder %s2520_s9, %s2168_s11  ;;  %p2172_p4 = scmp.lt.u32.totalorder %s2168_s11, %s2520_s9 }
 0x2b5   :  { %p2174_p5 = pnand %p2172_p4, %p2169_p3 }
 0x2b7   :  { %2177 = shalt.err (!%p2174_p5)
}
 0x2b8   :  { %1785 = dma.vmem_to_hbm [thread:$0]  %s1780_s7, 256, %s2520_s9, [#allocation4], %s2213_s14, %s2213_s14, %s2214_s18  }
 0x2b9   :  { %s2222_s9 = smov [#allocation12]  }
 0x2ba   :  { %s1791_s14 = sshll.u32 %s2222_s9, 4  ;;  %s1792_s14 = int_to_ptr.vmem [resolvable:$true] %s1791_s14 }
 0x2bb   :  { %s2178_s18 = scalar_lea.vmem %s1792_s14, 8192  ;;  %p2183_p7 = scmp.lt.s32.totalorder %s1792_s14, %s1792_s14 }
 0x2bc   :  { %p2179_p6 = scmp.ne.s32.totalorder %s1792_s14, %s2178_s18  ;;  %p2184_p8 = scmp.lt.s32.totalorder %s2178_s18, %s2178_s18 }
 0x2be   :  { %p2185_p9 = por %p2184_p8, %p2183_p7 }
 0x2c0   :  { %p2186_p10 = pnand %p2185_p9, %p2179_p6 }
 0x347   :  { %v544_v10 = vpop.f32.mrb[2].mxu0  ;;  %v621_v37 = vpop.f32.mrb[2].mxu1 }
 0x348   :  { %1710 = vst [vmem:[#allocation12] sm:$0xff] %v544_v10  ;;  %1712 = vst [vmem:[#allocation12 + $0x10] sm:$0xff] %v621_v37  ;;  %v546_v50 = vpop.f32.mrb[3].mxu0  ;;  %v623_v4 = vpop.f32.mrb[3].mxu1 }
 0x349   :  { %1711 = vst [vmem:[#allocation12 + $0x8] sm:$0xff] %v546_v50  ;;  %1713 = vst [vmem:[#allocation12 + $0x18] sm:$0xff] %v623_v4 }
 0x34b   :  { %v550_v5 = vpop.f32.mrb[4].mxu0  ;;  %v627_v6 = vpop.f32.mrb[4].mxu1 }
 0x34c   :  { %1742 = vst [vmem:[#allocation12 + $0x100] sm:$0xff] %v550_v5  ;;  %1744 = vst [vmem:[#allocation12 + $0x110] sm:$0xff] %v627_v6  ;;  %v552_v7 = vpop.f32.mrb[5].mxu0  ;;  %v629_v8 = vpop.f32.mrb[5].mxu1 }
 0x34d   :  { %1743 = vst [vmem:[#allocation12 + $0x108] sm:$0xff] %v552_v7  ;;  %1745 = vst [vmem:[#allocation12 + $0x118] sm:$0xff] %v629_v8 }
 0x34f   :  { %v698_v9 = vpop.f32.mrb[6].mxu0  ;;  %v775_v11 = vpop.f32.mrb[6].mxu1 }
 0x350   :  { %1714 = vst [vmem:[#allocation12 + $0x20] sm:$0xff] %v698_v9  ;;  %1716 = vst [vmem:[#allocation12 + $0x30] sm:$0xff] %v775_v11  ;;  %v700_v12 = vpop.f32.mrb[7].mxu0  ;;  %v777_v13 = vpop.f32.mrb[7].mxu1 }
 0x351   :  { %1715 = vst [vmem:[#allocation12 + $0x28] sm:$0xff] %v700_v12  ;;  %1717 = vst [vmem:[#allocation12 + $0x38] sm:$0xff] %v777_v13 }
 0x353   :  { %v704_v14 = vpop.f32.mrb[8].mxu0  ;;  %v781_v15 = vpop.f32.mrb[8].mxu1 }
 0x354   :  { %1746 = vst [vmem:[#allocation12 + $0x120] sm:$0xff] %v704_v14  ;;  %1748 = vst [vmem:[#allocation12 + $0x130] sm:$0xff] %v781_v15  ;;  %v706_v16 = vpop.f32.mrb[9].mxu0  ;;  %v783_v17 = vpop.f32.mrb[9].mxu1 }
 0x355   :  { %1747 = vst [vmem:[#allocation12 + $0x128] sm:$0xff] %v706_v16  ;;  %1749 = vst [vmem:[#allocation12 + $0x138] sm:$0xff] %v783_v17 }
 0x357   :  { %v852_v18 = vpop.f32.mrb[10].mxu0  ;;  %v929_v19 = vpop.f32.mrb[10].mxu1 }
 0x358   :  { %1718 = vst [vmem:[#allocation12 + $0x40] sm:$0xff] %v852_v18  ;;  %1720 = vst [vmem:[#allocation12 + $0x50] sm:$0xff] %v929_v19  ;;  %v854_v20 = vpop.f32.mrb[11].mxu0  ;;  %v931_v21 = vpop.f32.mrb[11].mxu1 }
 0x359   :  { %1719 = vst [vmem:[#allocation12 + $0x48] sm:$0xff] %v854_v20  ;;  %1721 = vst [vmem:[#allocation12 + $0x58] sm:$0xff] %v931_v21 }
 0x35b   :  { %v858_v22 = vpop.f32.mrb[12].mxu0  ;;  %v935_v23 = vpop.f32.mrb[12].mxu1 }
 0x35c   :  { %1750 = vst [vmem:[#allocation12 + $0x140] sm:$0xff] %v858_v22  ;;  %1752 = vst [vmem:[#allocation12 + $0x150] sm:$0xff] %v935_v23  ;;  %v860_v24 = vpop.f32.mrb[13].mxu0  ;;  %v937_v25 = vpop.f32.mrb[13].mxu1 }
 0x35d   :  { %1751 = vst [vmem:[#allocation12 + $0x148] sm:$0xff] %v860_v24  ;;  %1753 = vst [vmem:[#allocation12 + $0x158] sm:$0xff] %v937_v25 }
 0x35f   :  { %v1006_v26 = vpop.f32.mrb[14].mxu0  ;;  %v1083_v27 = vpop.f32.mrb[14].mxu1 }
 0x360   :  { %1722 = vst [vmem:[#allocation12 + $0x60] sm:$0xff] %v1006_v26  ;;  %1724 = vst [vmem:[#allocation12 + $0x70] sm:$0xff] %v1083_v27  ;;  %v1008_v28 = vpop.f32.mrb[15].mxu0  ;;  %v1085_v29 = vpop.f32.mrb[15].mxu1 }
 0x361   :  { %1723 = vst [vmem:[#allocation12 + $0x68] sm:$0xff] %v1008_v28  ;;  %1725 = vst [vmem:[#allocation12 + $0x78] sm:$0xff] %v1085_v29 }
 0x363   :  { %v1012_v30 = vpop.f32.mrb[16].mxu0  ;;  %v1089_v31 = vpop.f32.mrb[16].mxu1 }
 0x364   :  { %1754 = vst [vmem:[#allocation12 + $0x160] sm:$0xff] %v1012_v30  ;;  %1756 = vst [vmem:[#allocation12 + $0x170] sm:$0xff] %v1089_v31  ;;  %v1014_v32 = vpop.f32.mrb[17].mxu0  ;;  %v1091_v33 = vpop.f32.mrb[17].mxu1 }
 0x365   :  { %1755 = vst [vmem:[#allocation12 + $0x168] sm:$0xff] %v1014_v32  ;;  %1757 = vst [vmem:[#allocation12 + $0x178] sm:$0xff] %v1091_v33 }
 0x367   :  { %v1160_v34 = vpop.f32.mrb[18].mxu0  ;;  %v1237_v35 = vpop.f32.mrb[18].mxu1 }
 0x368   :  { %1726 = vst [vmem:[#allocation12 + $0x80] sm:$0xff] %v1160_v34  ;;  %1728 = vst [vmem:[#allocation12 + $0x90] sm:$0xff] %v1237_v35  ;;  %v1162_v36 = vpop.f32.mrb[19].mxu0  ;;  %v1239_v38 = vpop.f32.mrb[19].mxu1 }
 0x369   :  { %1727 = vst [vmem:[#allocation12 + $0x88] sm:$0xff] %v1162_v36  ;;  %1729 = vst [vmem:[#allocation12 + $0x98] sm:$0xff] %v1239_v38 }
 0x36b   :  { %v1166_v39 = vpop.f32.mrb[20].mxu0  ;;  %v1243_v40 = vpop.f32.mrb[20].mxu1 }
 0x36c   :  { %1758 = vst [vmem:[#allocation12 + $0x180] sm:$0xff] %v1166_v39  ;;  %1760 = vst [vmem:[#allocation12 + $0x190] sm:$0xff] %v1243_v40  ;;  %v1168_v41 = vpop.f32.mrb[21].mxu0  ;;  %v1245_v42 = vpop.f32.mrb[21].mxu1 }
 0x36d   :  { %1759 = vst [vmem:[#allocation12 + $0x188] sm:$0xff] %v1168_v41  ;;  %1761 = vst [vmem:[#allocation12 + $0x198] sm:$0xff] %v1245_v42 }
 0x36f   :  { %v1314_v43 = vpop.f32.mrb[22].mxu0  ;;  %v1391_v44 = vpop.f32.mrb[22].mxu1 }
 0x370   :  { %1730 = vst [vmem:[#allocation12 + $0xa0] sm:$0xff] %v1314_v43  ;;  %1732 = vst [vmem:[#allocation12 + $0xb0] sm:$0xff] %v1391_v44  ;;  %v1316_v45 = vpop.f32.mrb[23].mxu0  ;;  %v1393_v46 = vpop.f32.mrb[23].mxu1 }
 0x371   :  { %1731 = vst [vmem:[#allocation12 + $0xa8] sm:$0xff] %v1316_v45  ;;  %1733 = vst [vmem:[#allocation12 + $0xb8] sm:$0xff] %v1393_v46 }
 0x373   :  { %v1320_v47 = vpop.f32.mrb[24].mxu0  ;;  %v1397_v48 = vpop.f32.mrb[24].mxu1 }
 0x374   :  { %1762 = vst [vmem:[#allocation12 + $0x1a0] sm:$0xff] %v1320_v47  ;;  %1764 = vst [vmem:[#allocation12 + $0x1b0] sm:$0xff] %v1397_v48  ;;  %v1322_v49 = vpop.f32.mrb[25].mxu0  ;;  %v1399_v51 = vpop.f32.mrb[25].mxu1 }
 0x375   :  { %1763 = vst [vmem:[#allocation12 + $0x1a8] sm:$0xff] %v1322_v49  ;;  %1765 = vst [vmem:[#allocation12 + $0x1b8] sm:$0xff] %v1399_v51 }
 0x377   :  { %v1468_v52 = vpop.f32.mrb[26].mxu0  ;;  %v1545_v53 = vpop.f32.mrb[26].mxu1 }
 0x378   :  { %1734 = vst [vmem:[#allocation12 + $0xc0] sm:$0xff] %v1468_v52  ;;  %1736 = vst [vmem:[#allocation12 + $0xd0] sm:$0xff] %v1545_v53  ;;  %v1470_v54 = vpop.f32.mrb[27].mxu0  ;;  %v1547_v55 = vpop.f32.mrb[27].mxu1 }
 0x379   :  { %1735 = vst [vmem:[#allocation12 + $0xc8] sm:$0xff] %v1470_v54  ;;  %1737 = vst [vmem:[#allocation12 + $0xd8] sm:$0xff] %v1547_v55 }
 0x37b   :  { %v1474_v56 = vpop.f32.mrb[28].mxu0  ;;  %v1551_v57 = vpop.f32.mrb[28].mxu1 }
 0x37c   :  { %1766 = vst [vmem:[#allocation12 + $0x1c0] sm:$0xff] %v1474_v56  ;;  %1768 = vst [vmem:[#allocation12 + $0x1d0] sm:$0xff] %v1551_v57  ;;  %v1476_v58 = vpop.f32.mrb[29].mxu0  ;;  %v1553_v59 = vpop.f32.mrb[29].mxu1 }
 0x37d   :  { %1767 = vst [vmem:[#allocation12 + $0x1c8] sm:$0xff] %v1476_v58  ;;  %1769 = vst [vmem:[#allocation12 + $0x1d8] sm:$0xff] %v1553_v59 }
 0x37f   :  { %v1622_v60 = vpop.f32.mrb[30].mxu0  ;;  %v1699_v61 = vpop.f32.mrb[30].mxu1 }
 0x380   :  { %1738 = vst [vmem:[#allocation12 + $0xe0] sm:$0xff] %v1622_v60  ;;  %1740 = vst [vmem:[#allocation12 + $0xf0] sm:$0xff] %v1699_v61  ;;  %v1624_v62 = vpop.f32.mrb[31].mxu0  ;;  %v1701_v63 = vpop.f32.mrb[31].mxu1 }
 0x381   :  { %1739 = vst [vmem:[#allocation12 + $0xe8] sm:$0xff] %v1624_v62  ;;  %1741 = vst [vmem:[#allocation12 + $0xf8] sm:$0xff] %v1701_v63 }
 0x383   :  { %v1628_v0 = vpop.f32.mrb[32].mxu0  ;;  %v1705_v1 = vpop.f32.mrb[32].mxu1 }
 0x384   :  { %1770 = vst [vmem:[#allocation12 + $0x1e0] sm:$0xff] %v1628_v0  ;;  %1772 = vst [vmem:[#allocation12 + $0x1f0] sm:$0xff] %v1705_v1  ;;  %v1630_v2 = vpop.f32.mrb[33].mxu0  ;;  %v1707_v3 = vpop.f32.mrb[33].mxu1 }
 0x385   :  { %1771 = vst [vmem:[#allocation12 + $0x1e8] sm:$0xff] %v1630_v2  ;;  %1773 = vst [vmem:[#allocation12 + $0x1f8] sm:$0xff] %v1707_v3 }
 0x386   :  { %2189 = shalt.err (!%p2186_p10)
}
 0x387   :  { %s2190_s21 = scalar_lea.hbm %s2521_s10, 8192 }
 0x388   :  { %p2191_p11 = scmp.ne.s32.totalorder %s2521_s10, %s2190_s21  ;;  %p2194_p12 = scmp.lt.u32.totalorder %s2190_s21, %s2521_s10 }
 0x38a   :  { %p2196_p13 = pnand %p2194_p12, %p2191_p11 }
 0x38c   :  { %2199 = shalt.err (!%p2196_p13)
}
 0x38d   :  { %1797 = dma.vmem_to_hbm [thread:$0]  %s1792_s14, 8192, %s2521_s10, [#allocation13], %s2217_s3, %s2217_s3, %s2218_s12  }
 0x38e   :  { %2206 = dma.done.wait [#allocation4], 256  }
 0x38f   :  { %2207 = vsyncadd [#allocation4], 4294967040 }
 0x390   :  { %2208 = dma.done.wait [#allocation13], 8192  }
 0x391   :  { %2209 = vsyncadd [#allocation13], 4294959104 }
 0x392   :  { %1804 = vsyncpa [#allocation3], 1 }
 0x393   :  { %1805 = vsyncpa [#allocation6], 1 }
 0x394   :  { %1806 = vsyncpa [#allocation9], 1 }
 0x395   :  { %1807 = vsyncpa [#allocation4], 1 }
 0x396   :  { %1808 = vsyncpa [#allocation13], 1 }

</bundles_post_ra>
